<compile_context>
chip_gen: v7x
topology: tpu7x:2x2x1
jax: 0.10.0
libtpu: 0.0.40
codegen_flags: <defaults>
</compile_context>

<pallas_src>
import functools

import jax
import jax.numpy as jnp
import numpy as np
from jax.experimental import pallas as pl
from jax.experimental.pallas import tpu as pltpu


def _pool_mlp_kernel(x_ref, w1_ref, b1_ref, w2_ref, b2_ref, gate_ref, sum_ref,
                     *, inv_hw):
    # x_ref:  (C, HW_TILE)   one spatial tile of one batch element (batch squeezed)
    # w1_ref: (Cr, C)  b1_ref: (Cr, 1)  w2_ref: (C, Cr)  b2_ref: (C, 1)
    # gate_ref: (C, 1) f32 output     sum_ref: (C, 1) f32 accumulator scratch
    t = pl.program_id(1)

    @pl.when(t == 0)
    def _():
        sum_ref[...] = jnp.zeros_like(sum_ref)

    # Accumulate the spatial sum in f32 (accuracy for bf16 inputs).
    xf = x_ref[...].astype(jnp.float32)                       # (C, T)
    sum_ref[...] += jnp.sum(xf, axis=-1, keepdims=True)       # (C, 1)

    @pl.when(t == pl.num_programs(1) - 1)
    def _():
        pooled = sum_ref[...] * inv_hw                        # (C, 1)  AdaptiveAvgPool2d(1)
        # Conv2d(C -> C/4, k=1) + ReLU  ==  W1 @ pooled + b1  (MXU)
        h = jnp.dot(w1_ref[...], pooled,
                    preferred_element_type=jnp.float32)        # (Cr, 1)
        h = jnp.maximum(h + b1_ref[...], 0.0)
        # Conv2d(C/4 -> C, k=1) + Sigmoid                      (MXU)
        a = jnp.dot(w2_ref[...], h,
                    preferred_element_type=jnp.float32)        # (C, 1)
        gate_ref[...] = jax.nn.sigmoid(a + b2_ref[...])


def _apply_gate_kernel(x_ref, gate_ref, o_ref):
    # x_ref: (C, T) in native dtype (no f32 upcast of the slab), gate_ref: (C, 1) f32
    x = x_ref[...]
    a = gate_ref[...].astype(x.dtype)
    o_ref[...] = (x * a).astype(o_ref.dtype)


def _pick_hw_tile(hw, c, itemsize, *, n_blocks, budget_bytes, max_tile):
    """Largest multiple-of-128 divisor of `hw` (<= max_tile) whose resident
    double-buffered blocks fit `budget_bytes`."""
    if hw % 128 != 0:
        # Fall back to one full-width (masked) tile.  For production shapes with
        # small non-128-multiple HW (e.g. 7x7, 14x14) a channels-last (N, HW, C)
        # layout would be lane-dense, but that requires an NHWC surrounding graph.
        return hw
    best = 128
    t = 128
    while t <= min(hw, max_tile):
        if hw % t == 0 and n_blocks * c * t * itemsize <= budget_bytes:
            best = t
        t += 128
    return best


def _vmem_limit_bytes(needed):
    # >= 32 MiB (raises v5e's 16 MiB scoped default), <= 48 MiB (safe on v7x's 64 MiB).
    return int(min(max(needed + (4 << 20), 32 << 20), 48 << 20))


def channel_gated_attention(x_nchw, w1, b1, w2, b2):
    """x_nchw: (N, C, H, W); w1: (C//4, C); b1: (C//4,); w2: (C, C//4); b2: (C,)."""
    N, C, H, W = x_nchw.shape
    Cr = C // 4
    HW = H * W
    x = x_nchw.reshape(N, C, HW)
    itemsize = jnp.dtype(x_nchw.dtype).itemsize
    w_bytes = (Cr * C + Cr + C * Cr + C) * 4

    # ---- Pass A: global average pool + 2-layer MLP -> (N, C, 1) gate in f32 ----
    pool_tile = _pick_hw_tile(HW, C, itemsize, n_blocks=2,
                              budget_bytes=8 << 20, max_tile=512)
    vmem_a = _vmem_limit_bytes(
        2 * C * pool_tile * itemsize + 2 * C * 4 + 2 * w_bytes + C * 4)
    # NOTE: the weight/bias specs never change block index; Pallas re-uses the
    # buffer across steps, so explicit pl.Buffered(1) is skipped for simplicity.
    gate = pl.pallas_call(
        functools.partial(_pool_mlp_kernel, inv_hw=1.0 / HW),
        out_shape=jax.ShapeDtypeStruct((N, C, 1), jnp.float32),
        grid=(N, HW // pool_tile),
        in_specs=[
            pl.BlockSpec((None, C, pool_tile), lambda n, t: (n, 0, t)),
            pl.BlockSpec((Cr, C), lambda n, t: (0, 0)),
            pl.BlockSpec((Cr, 1), lambda n, t: (0, 0)),
            pl.BlockSpec((C, Cr), lambda n, t: (0, 0)),
            pl.BlockSpec((C, 1), lambda n, t: (0, 0)),
        ],
        out_specs=pl.BlockSpec((None, C, 1), lambda n, t: (n, 0, 0)),
        scratch_shapes=[pltpu.VMEM((C, 1), jnp.float32)],
        compiler_params=pltpu.CompilerParams(
            dimension_semantics=("parallel", "arbitrary"),
            vmem_limit_bytes=vmem_a),
    )(x, w1, b1.reshape(Cr, 1), w2, b2.reshape(C, 1))

    # ---- Pass B: apply the gate with large lane-dense tiles (native dtype) ----
    apply_tile = _pick_hw_tile(HW, C, itemsize, n_blocks=4,
                               budget_bytes=24 << 20, max_tile=8192)
    vmem_b = _vmem_limit_bytes(4 * C * apply_tile * itemsize + 2 * C * 4)
    out = pl.pallas_call(
        _apply_gate_kernel,
        out_shape=jax.ShapeDtypeStruct((N, C, HW), x_nchw.dtype),
        grid=(N, HW // apply_tile),
        in_specs=[
            pl.BlockSpec((None, C, apply_tile), lambda n, t: (n, 0, t)),
            pl.BlockSpec((None, C, 1), lambda n, t: (n, 0, 0)),
        ],
        out_specs=pl.BlockSpec((None, C, apply_tile), lambda n, t: (n, 0, t)),
        compiler_params=pltpu.CompilerParams(
            dimension_semantics=("parallel", "parallel"),
            vmem_limit_bytes=vmem_b),
    )(x, gate)

    return out.reshape(N, C, H, W)


def _reference(x, w1, b1, w2, b2):
    xf = x.astype(jnp.float32)
    pooled = xf.mean(axis=(2, 3))                                       # (N, C)
    h = jnp.maximum(
        jnp.dot(pooled, w1.T, precision=jax.lax.Precision.HIGHEST) + b1, 0.0)
    a = jax.nn.sigmoid(
        jnp.dot(h, w2.T, precision=jax.lax.Precision.HIGHEST) + b2)     # (N, C)
    return x * a[:, :, None, None].astype(x.dtype)


if __name__ == "__main__":
    # Small but tile-aligned shapes: C divisible by 4 (Cr=32), HW=1024 lane-dense,
    # and the pool pass runs 2 HW tiles per batch so the accumulator path executes.
    N, C, H, W = 2, 128, 32, 32
    Cr = C // 4

    key = jax.random.PRNGKey(0)
    kx, k1, k2, k3, k4 = jax.random.split(key, 5)

    x = jax.random.normal(kx, (N, C, H, W), dtype=jnp.float32)
    w1 = jax.random.normal(k1, (Cr, C), dtype=jnp.float32) * (1.0 / np.sqrt(C))
    b1 = jax.random.normal(k2, (Cr,), dtype=jnp.float32) * 0.1
    w2 = jax.random.normal(k3, (C, Cr), dtype=jnp.float32) * (1.0 / np.sqrt(Cr))
    b2 = jax.random.normal(k4, (C,), dtype=jnp.float32) * 0.1

    out = jax.block_until_ready(channel_gated_attention(x, w1, b1, w2, b2))
    ref = jax.block_until_ready(_reference(x, w1, b1, w2, b2))
    np.testing.assert_allclose(np.asarray(out), np.asarray(ref),
                               rtol=1e-4, atol=2e-5)

    print("KERNEL_OK")
</pallas_src>

<mosaic_0001>
module attributes {stable_mosaic.version = 11 : i64} {
  func.func @_pool_mlp_kernel(%arg0: i32, %arg1: i32, %arg2: memref<1x128x512xf32, #tpu.memory_space<vmem>>, %arg3: memref<32x128xf32, #tpu.memory_space<vmem>>, %arg4: memref<32x1xf32, #tpu.memory_space<vmem>>, %arg5: memref<128x32xf32, #tpu.memory_space<vmem>>, %arg6: memref<128x1xf32, #tpu.memory_space<vmem>>, %arg7: memref<1x128x1xf32, #tpu.memory_space<vmem>>, %arg8: memref<128x1xf32, #tpu.memory_space<vmem>>) attributes {dimension_semantics = [#tpu.dimension_semantics<parallel>, #tpu.dimension_semantics<arbitrary>], iteration_bounds = array<i64: 2, 2>, scalar_prefetch = 0 : i64, scratch_operands = 1 : i64, tpu.core_type = #tpu.core_type<tc>, window_params = [{transform_indices = @transform_0, window_bounds = array<i64: 1, 128, 512>}, {pipeline_mode = #tpu.pipeline_mode<synchronous>, transform_indices = @transform_1, window_bounds = array<i64: 32, 128>}, {pipeline_mode = #tpu.pipeline_mode<synchronous>, transform_indices = @transform_2, window_bounds = array<i64: 32, 1>}, {pipeline_mode = #tpu.pipeline_mode<synchronous>, transform_indices = @transform_3, window_bounds = array<i64: 128, 32>}, {pipeline_mode = #tpu.pipeline_mode<synchronous>, transform_indices = @transform_4, window_bounds = array<i64: 128, 1>}, {transform_indices = @transform_5, window_bounds = array<i64: 1, 128, 1>}]} {
    %c0_i32 = arith.constant 0 : i32
    %0 = arith.cmpi eq, %arg1, %c0_i32 : i32
    %1 = arith.extui %0 : i1 to i32
    %c0_i32_0 = arith.constant 0 : i32
    %2 = arith.cmpi ne, %1, %c0_i32_0 : i32
    scf.if %2 {
      %cst_8 = arith.constant 0.000000e+00 : f32
      %13 = vector.broadcast %cst_8 : f32 to vector<128x1xf32>
      %c0_9 = arith.constant 0 : index
      %c0_10 = arith.constant 0 : index
      %14 = vector.load %arg8[%c0_9, %c0_10] : memref<128x1xf32, #tpu.memory_space<vmem>>, vector<128x1xf32>
      tpu.vector_store %arg8[%c0_9, %c0_10], %13 {strides = array<i32>} : memref<128x1xf32, #tpu.memory_space<vmem>>, vector<128x1xf32>,
    } else {
    }
    %c0 = arith.constant 0 : index
    %c0_1 = arith.constant 0 : index
    %c0_2 = arith.constant 0 : index
    %3 = vector.load %arg2[%c0, %c0_1, %c0_2] : memref<1x128x512xf32, #tpu.memory_space<vmem>>, vector<1x128x512xf32>
    %4 = vector.shape_cast %3 : vector<1x128x512xf32> to vector<128x512xf32>
    %c0_3 = arith.constant 0 : index
    %c0_4 = arith.constant 0 : index
    %5 = vector.load %arg8[%c0_3, %c0_4] : memref<128x1xf32, #tpu.memory_space<vmem>>, vector<128x1xf32>
    %cst = arith.constant dense<0.000000e+00> : vector<128xf32>
    %6 = vector.multi_reduction <add>, %4, %cst [1] : vector<128x512xf32> to vector<128xf32>
    %7 = vector.shape_cast %6 : vector<128xf32> to vector<128x1xf32>
    %8 = arith.addf %5, %7 : vector<128x1xf32>
    %c0_5 = arith.constant 0 : index
    %c0_6 = arith.constant 0 : index
    %9 = vector.load %arg8[%c0_5, %c0_6] : memref<128x1xf32, #tpu.memory_space<vmem>>, vector<128x1xf32>
    tpu.vector_store %arg8[%c0_5, %c0_6], %8 {strides = array<i32>} : memref<128x1xf32, #tpu.memory_space<vmem>>, vector<128x1xf32>,
    %c1_i32 = arith.constant 1 : i32
    %10 = arith.cmpi eq, %arg1, %c1_i32 : i32
    %11 = arith.extui %10 : i1 to i32
    %c0_i32_7 = arith.constant 0 : i32
    %12 = arith.cmpi ne, %11, %c0_i32_7 : i32
    scf.if %12 {
      %c0_8 = arith.constant 0 : index
      %c0_9 = arith.constant 0 : index
      %13 = vector.load %arg8[%c0_8, %c0_9] : memref<128x1xf32, #tpu.memory_space<vmem>>, vector<128x1xf32>
      %cst_10 = arith.constant 9.765625E-4 : f32
      %14 = vector.broadcast %cst_10 : f32 to vector<128x1xf32>
      %15 = arith.mulf %13, %14 : vector<128x1xf32>
      %c0_11 = arith.constant 0 : index
      %c0_12 = arith.constant 0 : index
      %16 = vector.load %arg3[%c0_11, %c0_12] : memref<32x128xf32, #tpu.memory_space<vmem>>, vector<32x128xf32>
      %cst_13 = arith.constant dense<0.000000e+00> : vector<32x1xf32>
      %17 = tpu.matmul %16, %15, %cst_13 {dimension_numbers = #tpu.dot_dimension_numbers<[1], [0], [0], [1], [0, 0, 1, 1], [], []>} : vector<32x128xf32>, vector<128x1xf32>, vector<32x1xf32> -> vector<32x1xf32>
      %c0_14 = arith.constant 0 : index
      %c0_15 = arith.constant 0 : index
      %18 = vector.load %arg4[%c0_14, %c0_15] : memref<32x1xf32, #tpu.memory_space<vmem>>, vector<32x1xf32>
      %19 = arith.addf %17, %18 : vector<32x1xf32>
      %cst_16 = arith.constant 0.000000e+00 : f32
      %20 = vector.broadcast %cst_16 : f32 to vector<32x1xf32>
      %21 = arith.maximumf %19, %20 : vector<32x1xf32>
      %c0_17 = arith.constant 0 : index
      %c0_18 = arith.constant 0 : index
      %22 = vector.load %arg5[%c0_17, %c0_18] : memref<128x32xf32, #tpu.memory_space<vmem>>, vector<128x32xf32>
      %cst_19 = arith.constant dense<0.000000e+00> : vector<128x1xf32>
      %23 = tpu.matmul %22, %21, %cst_19 {dimension_numbers = #tpu.dot_dimension_numbers<[1], [0], [0], [1], [0, 0, 1, 1], [], []>} : vector<128x32xf32>, vector<32x1xf32>, vector<128x1xf32> -> vector<128x1xf32>
      %c0_20 = arith.constant 0 : index
      %c0_21 = arith.constant 0 : index
      %24 = vector.load %arg6[%c0_20, %c0_21] : memref<128x1xf32, #tpu.memory_space<vmem>>, vector<128x1xf32>
      %25 = arith.addf %23, %24 : vector<128x1xf32>
      %26 = arith.negf %25 : vector<128x1xf32>
      %27 = math.exp %26 : vector<128x1xf32>
      %cst_22 = arith.constant 1.000000e+00 : f32
      %28 = vector.broadcast %cst_22 : f32 to vector<128x1xf32>
      %29 = arith.addf %28, %27 : vector<128x1xf32>
      %30 = arith.divf %28, %29 : vector<128x1xf32>
      %c0_23 = arith.constant 0 : index
      %c0_24 = arith.constant 0 : index
      %c0_25 = arith.constant 0 : index
      %31 = vector.load %arg7[%c0_23, %c0_24, %c0_25] : memref<1x128x1xf32, #tpu.memory_space<vmem>>, vector<1x128x1xf32>
      %32 = vector.shape_cast %31 : vector<1x128x1xf32> to vector<128x1xf32>
      %33 = vector.shape_cast %30 : vector<128x1xf32> to vector<1x128x1xf32>
      tpu.vector_store %arg7[%c0_23, %c0_24, %c0_25], %33 {strides = array<i32>} : memref<1x128x1xf32, #tpu.memory_space<vmem>>, vector<1x128x1xf32>,
    } else {
    }
    return
  }
  func.func @transform_0(%arg0: i32, %arg1: i32) -> (i32, i32, i32) {
    %c0_i32 = arith.constant 0 : i32
    %c0_i32_0 = arith.constant 0 : i32
    return %arg0, %c0_i32, %arg1 : i32, i32, i32
  }
  func.func @transform_1(%arg0: i32, %arg1: i32) -> (i32, i32) {
    %c0_i32 = arith.constant 0 : i32
    %c0_i32_0 = arith.constant 0 : i32
    %c0_i32_1 = arith.constant 0 : i32
    return %c0_i32, %c0_i32_0 : i32, i32
  }
  func.func @transform_2(%arg0: i32, %arg1: i32) -> (i32, i32) {
    %c0_i32 = arith.constant 0 : i32
    %c0_i32_0 = arith.constant 0 : i32
    %c0_i32_1 = arith.constant 0 : i32
    return %c0_i32, %c0_i32_0 : i32, i32
  }
  func.func @transform_3(%arg0: i32, %arg1: i32) -> (i32, i32) {
    %c0_i32 = arith.constant 0 : i32
    %c0_i32_0 = arith.constant 0 : i32
    %c0_i32_1 = arith.constant 0 : i32
    return %c0_i32, %c0_i32_0 : i32, i32
  }
  func.func @transform_4(%arg0: i32, %arg1: i32) -> (i32, i32) {
    %c0_i32 = arith.constant 0 : i32
    %c0_i32_0 = arith.constant 0 : i32
    %c0_i32_1 = arith.constant 0 : i32
    return %c0_i32, %c0_i32_0 : i32, i32
  }
  func.func @transform_5(%arg0: i32, %arg1: i32) -> (i32, i32, i32) {
    %c0_i32 = arith.constant 0 : i32
    %c0_i32_0 = arith.constant 0 : i32
    %c0_i32_1 = arith.constant 0 : i32
    return %arg0, %c0_i32, %c0_i32_0 : i32, i32, i32
  }
}

</mosaic_0001>

<bundles_post_ra>
// kernel: tpu_custom_call.1
= control target key start
LH: loop header
LB: loop body
LE: loop exit
PB: predicated region body
PF: predicated region fallthrough
CT: control target
= control target key end

     0   :  { %s1918_s0 = inlined_call_operand.hbm [shape: f32[2,128,1024], index: 0, kind: input, shape index: {}]   ;;  %s1919_s1 = inlined_call_operand.vmem [shape: f32[32,128], index: 1, kind: input, shape index: {}]   ;;  %s1920_s2 = inlined_call_operand.vmem [shape: f32[32,1], index: 2, kind: input, shape index: {}]   ;;  %s1921_s3 = inlined_call_operand.vmem [shape: f32[128,32], index: 3, kind: input, shape index: {}]   ;;  %s1922_s4 = inlined_call_operand.vmem [shape: f32[128,1], index: 4, kind: input, shape index: {}]   ;;  %s1923_s5 = inlined_call_operand.vmem [shape: f32[2,128,1], index: 5, kind: output, shape index: {}]  }
   0x1   :  { %1926 = sst [smem:[#allocation7_spill]] %s1922_s4 }
   0x2   :  { %10 = vsyncpa [#allocation4], 0 }
   0x3   :  { %12 = vsyncpa [#allocation4 + $0x1], 0  ;;  %s1499_s18 = smov 0   ;;  %s1501_s19 = smov 0  }
   0x4   :  { %s1503_s20 = smov 0   ;;  %s1505_s21 = smov 0  }
   0x5   :  { %s1507_s22 = smov 0   ;;  %s1509_s23 = smov 0  }
   0x6   :  { %s1511_s24 = smov 0   ;;  %s1513_s25 = smov 0  }
   0x7 LB: > { %s1028_s26 = sadd.s32 4294967295, %s1462_s25   ;;  %s27_s27 = sadd.s32 1, %s1454_s23  ;;  %s1462_s25 = sphi %s1513_s25, %s18_s25   ;;  %s1458_s24 = sphi %s1511_s24, %s1939_s24   ;;  %s1454_s23 = sphi %s1509_s23, %s1938_s23   ;;  %s1450_s22 = sphi %s1507_s22, %s1937_s22   ;;  %s1446_s21 = sphi %s1505_s21, %s1936_s21   ;;  %s1442_s20 = sphi %s1503_s20, %s1935_s20   ;;  %s1438_s19 = sphi %s1501_s19, %s1934_s19   ;;  %s1434_s18 = sphi %s1499_s18, %s1933_s18  }
   0x8   : > { %p28_p0 = scmp.ge.s32.totalorder %s27_s27, 2  ;;  %s30_s28 = sadd.s32 1, %s1458_s24 }
   0x9   : > { %s39_s29 = sadd.s32 1, %s1442_s20  ;;  %p46_p1 = scmp.ne.s32.totalorder %s1442_s20, %s1438_s19 }
   0xa   : > { %s1941_s27 = smov (%p28_p0, %s27_s27), 0  ;;  %s1943_s28 = smov (!%p28_p0, %s30_s28), %s1458_s24 }
   0xb   : > { %1927 = sst [smem:[#allocation6_spill]] %s1941_s27  ;;  %s35_s30 = ssub.s32 %s1454_s23, %s1941_s27 }
   0xc   : > { %p47_p2 = scmp.eq.s32.totalorder %s1462_s25, 0  ;;  %p32_p3 = scmp.ge.s32.totalorder %s1943_s28, 2 }
   0xd   : > { %p52_p4 = scmp.ne.s32.totalorder %s1438_s19, %s1434_s18  ;;  %p53_p6 = scmp.eq.s32.totalorder %s1028_s26, 0 }
   0xe   : > { %p1550_p5 = por %p47_p2, %p46_p1  ;;  %s1945_s28 = smov (%p32_p3, %s1943_s28), 0 }
   0xf   : > { %p1556_p7 = por %p53_p6, %p52_p4  ;;  %s34_s8 = ssub.s32 %s1458_s24, %s1945_s28 }
  0x10   : > { %p1233_p8 = scmp.lt.s32.totalorder %s1462_s25, 4  ;;  %s36_s9 = sor.u32 %s35_s30, %s34_s8 }
  0x11   : > { %s198_s10 = sand.u32 1, %s1442_s20   ;;  %p37_p9 = scmp.eq.s32.totalorder %s36_s9, 0 }
  0x12   : > { %s1032_s11 = sshll.u32 %s198_s10, 9  ;;  %s1033_s12 = sshll.u32 %s1454_s23, 2 }
  0x13   : > { %s1566_s13 = scalar_select %p37_p9, %s1442_s20, %s39_s29  }
  0x14   : > { %s1034_s14 = sshll.u32 %s1458_s24, 7  ;;  %s202_s16 = scalar_lea.vmem [#allocation3], %s1032_s11 }
  0x15   : > { %s208_s15 = sadd.s32 %s1034_s14, %s1033_s12  ;;  %s211_s17 = sshll.u32 %s202_s16, 4  ;;  %s1569_s17 = int_to_ptr.vmem [resolvable:$true] %s211_s17 }
  0x16   : > { %s1035_s18 = sshll.u32 %s208_s15, 7  ;;  %p1580_p10 = pnand %p1233_p8, %p1550_p5 }
  0x17   : > { %s1574_s4 = scalar_lea.hbm %s1918_s0, %s1035_s18  ;;  %s1584_s30 = scalar_lea.sflag [#allocation4], %s198_s10 }
  0x18   : > { %s1366_s8 = scalar_lea.hbm %s1574_s4, 8192  ;;  %p1368_p12 = pneg %p1580_p10 }
  0x19   : > { %p1367_p11 = scmp.ne.s32.totalorder %s1574_s4, %s1366_s8  ;;  %s1371_s9 = scalar_lea.hbm %s1918_s0, 32768 }
  0x1a   : > { %p1372_p1 = scmp.lt.u32.totalorder %s1574_s4, %s1918_s0  ;;  %p1373_p2 = scmp.lt.u32.totalorder %s1371_s9, %s1366_s8 }
  0x1b   : > { %p1369_p13 = pnand %p1368_p12, %p1367_p11  ;;  %p1375_p4 = scmp.lt.u32.totalorder %s1366_s8, %s1574_s4 }
  0x1c   : > { %p1374_p3 = por %p1373_p2, %p1372_p1 }
  0x1d   : > { %p1370_p0 = pneg %p1369_p13 }
  0x1e   : > { %p1376_p5 = por %p1375_p4, %p1374_p3 }
  0x20   : > { %p1377_p6 = pnand %p1376_p5, %p1370_p0 }
  0x22   : > { %1380 = shalt.err (!%p1377_p6)
}
  0x23   : > { %s1381_s10 = scalar_lea.vmem %s1569_s17, 8192  ;;  %s1464_s14 = smov [#allocation3]  }
  0x24   : > { %p1382_p8 = scmp.ne.s32.totalorder %s1569_s17, %s1381_s10  ;;  %s1386_s15 = sshll.u32 %s1464_s14, 4  ;;  %s1387_s15 = int_to_ptr.vmem [resolvable:$false] %s1386_s15 }
  0x25   : > { %s1388_s16 = scalar_lea.vmem %s1387_s15, 16384  ;;  %p1389_p13 = scmp.lt.s32.totalorder %s1569_s17, %s1387_s15 }
  0x26   : > { %p1384_p9 = pnand %p1382_p8, %p1368_p12  ;;  %p1390_p1 = scmp.lt.s32.totalorder %s1388_s16, %s1381_s10 }
  0x28   : > { %p1385_p11 = pneg %p1384_p9  ;;  %p1391_p2 = por %p1390_p1, %p1389_p13 }
  0x2a   : > { %p1392_p3 = pnand %p1391_p2, %p1385_p11 }
  0x2c   : > { %1395 = shalt.err (!%p1392_p3)
}
  0x2d   : > { %s1465_s18 = smov 1024   ;;  %s1466_s26 = smov 512  }
  0x2e   : > { %s1467_s8 = smov 32   ;;  %p1036_p12 = scmp.ge.s32.totalorder %s1462_s25, 1 }
  0x2f   : > { %1232 = dma.hbm_to_vmem [thread:$0]  (!%p1580_p10), %s1574_s4, 8192, %s1569_s17, %s1584_s30, %s1465_s18, %s1466_s26, %s1467_s8  }
  0x30   : > { %p219_p0 = scmp.lt.s32.totalorder %s1462_s25, 5 }
  0x32   : > { %p220_p4 = pnand %p1036_p12, %p219_p0 }
  0x33   : > { %s225_s27 = sand.u32 (!%p220_p4), 1, %s1438_s19  }
  0x34   : > { %223 = sbr.rel (%p220_p4) target bundleno = 770 (0x302), region = 40  ;;  %s1037_s6 = sshll.u32 (!%p220_p4), %s225_s27, 9 }
  0x35   : > { %s226_s9 = scalar_lea.sflag (!%p220_p4), [#allocation4], %s225_s27  ;;  %s1615_s11 = scalar_lea.vmem (!%p220_p4), [#allocation3], %s1037_s6 }
  0x3b   : > { %1429 = dma.done.wait (%p1556_p7), %s226_s9, 8192  }
  0x3c   : > { %1431 = vsyncadd (%p1556_p7), %s226_s9, 4294959104  ;;  %p257_p5 = scmp.lt.s32.totalorder %s1450_s22, 1  ;;  %p1040_p10 = scmp.ne.s32.totalorder %s1446_s21, 0 }
  0x3d   : > { %vm266_vm0 = vcmask (!%p1040_p10), 7168   ;;  %v1468_v0 = vmov (!%p1040_p10), 0.0  }
  0x3e   : > { %s1947_s22 = smov (!%p257_p5, %s1450_s22), 1  ;;  %265 = sbr.rel (%p1040_p10) target bundleno = 71 (0x47), region = 48 }
  0x3f   : > { %s1076_s4 = sshll.u32 %s1947_s22, 7  ;;  %267 = vst.msk [vmem:[#allocation2] sm:$0xff] (!%p1040_p10), %vm266_vm0, %v1468_v0  ;;  %268 = vst.msk [vmem:[#allocation2 + $0x8] sm:$0xff] (!%p1040_p10), %vm266_vm0, %v1468_v0 }
  0x40   : > { %s1626_s30 = scalar_lea.vmem %s1923_s5, %s1076_s4  ;;  %269 = vst.msk [vmem:[#allocation2 + $0x10] sm:$0xff] (!%p1040_p10), %vm266_vm0, %v1468_v0  ;;  %270 = vst.msk [vmem:[#allocation2 + $0x18] sm:$0xff] (!%p1040_p10), %vm266_vm0, %v1468_v0 }
  0x41   : > { %271 = vst.msk [vmem:[#allocation2 + $0x20] sm:$0xff] (!%p1040_p10), %vm266_vm0, %v1468_v0  ;;  %272 = vst.msk [vmem:[#allocation2 + $0x28] sm:$0xff] (!%p1040_p10), %vm266_vm0, %v1468_v0 }
  0x42   : > { %273 = vst.msk [vmem:[#allocation2 + $0x30] sm:$0xff] (!%p1040_p10), %vm266_vm0, %v1468_v0  ;;  %274 = vst.msk [vmem:[#allocation2 + $0x38] sm:$0xff] (!%p1040_p10), %vm266_vm0, %v1468_v0 }
  0x43   : > { %275 = vst.msk [vmem:[#allocation2 + $0x40] sm:$0xff] (!%p1040_p10), %vm266_vm0, %v1468_v0  ;;  %276 = vst.msk [vmem:[#allocation2 + $0x48] sm:$0xff] (!%p1040_p10), %vm266_vm0, %v1468_v0 }
  0x44   : > { %277 = vst.msk [vmem:[#allocation2 + $0x50] sm:$0xff] (!%p1040_p10), %vm266_vm0, %v1468_v0  ;;  %278 = vst.msk [vmem:[#allocation2 + $0x58] sm:$0xff] (!%p1040_p10), %vm266_vm0, %v1468_v0 }
  0x45   : > { %279 = vst.msk [vmem:[#allocation2 + $0x60] sm:$0xff] %vm266_vm0, %v1468_v0  ;;  %280 = vst.msk [vmem:[#allocation2 + $0x68] sm:$0xff] %vm266_vm0, %v1468_v0 }
  0x46   : > { %281 = vst.msk [vmem:[#allocation2 + $0x70] sm:$0xff] %vm266_vm0, %v1468_v0  ;;  %282 = vst.msk [vmem:[#allocation2 + $0x78] sm:$0xff] %vm266_vm0, %v1468_v0 }
  0x47 PF: > { %v291_v1 = vld [vmem:[%s1615_s11 + $0x40] sm:$0xff]  ;;  %v292_v2 = vld [vmem:[%s1615_s11 + $0x48] sm:$0xff]  ;;  %v293_v3 = vld [vmem:[%s1615_s11 + $0x50] sm:$0xff]  ;;  %vm459_vm1 = vcmask 7168   ;;  %p1041_p7 = scmp.ne.s32.totalorder %s1446_s21, 1 }
  0x48   : > { %v373_v4 = vadd.f32 %v292_v2, %v291_v1  ;;  %v283_v5 = vld [vmem:[%s1615_s11] sm:$0xff]  ;;  %v284_v6 = vld [vmem:[%s1615_s11 + $0x8] sm:$0xff]  ;;  %v294_v7 = vld [vmem:[%s1615_s11 + $0x58] sm:$0xff]  ;;  %vm641_vm2 = vcmask (!%p1041_p7), 261120  }
  0x49   : > { %v285_v8 = vld [vmem:[%s1615_s11 + $0x10] sm:$0xff]  ;;  %v363_v9 = vadd.f32 %v284_v6, %v283_v5  ;;  %v295_v10 = vld [vmem:[%s1615_s11 + $0x60] sm:$0xff]  ;;  %v286_v12 = vld [vmem:[%s1615_s11 + $0x18] sm:$0xff] }
  0x4a   : > { %v374_v11 = vadd.f32 %v373_v4, %v293_v3  ;;  %v296_v13 = vld [vmem:[%s1615_s11 + $0x68] sm:$0xff]  ;;  %v297_v14 = vld [vmem:[%s1615_s11 + $0x70] sm:$0xff]  ;;  %v287_v17 = vld [vmem:[%s1615_s11 + $0x20] sm:$0xff] }
  0x4b   : > { %v364_v15 = vadd.f32 %v363_v9, %v285_v8  ;;  %v378_v16 = vadd.f32 %v296_v13, %v295_v10  ;;  %v288_v18 = vld [vmem:[%s1615_s11 + $0x28] sm:$0xff]  ;;  %v289_v19 = vld [vmem:[%s1615_s11 + $0x30] sm:$0xff]  ;;  %v298_v21 = vld [vmem:[%s1615_s11 + $0x78] sm:$0xff] }
  0x4c   : > { %v375_v20 = vadd.f32 %v374_v11, %v294_v7  ;;  %v368_v22 = vadd.f32 %v288_v18, %v287_v17  ;;  %v303_v23 = vld [vmem:[%s1615_s11 + $0xa0] sm:$0xff]  ;;  %v304_v24 = vld [vmem:[%s1615_s11 + $0xa8] sm:$0xff]  ;;  %v290_v27 = vld [vmem:[%s1615_s11 + $0x38] sm:$0xff] }
  0x4d   : > { %v365_v25 = vadd.f32 %v364_v15, %v286_v12  ;;  %v379_v26 = vadd.f32 %v378_v16, %v297_v14  ;;  %v305_v28 = vld [vmem:[%s1615_s11 + $0xb0] sm:$0xff]  ;;  %v388_v29 = vadd.f32 %v304_v24, %v303_v23  ;;  %v299_v30 = vld [vmem:[%s1615_s11 + $0x80] sm:$0xff]  ;;  %v306_v32 = vld [vmem:[%s1615_s11 + $0xb8] sm:$0xff] }
  0x4e   : > { %376 = vadd.xlane.f32.xlu1 %v375_v20  ;;  %v369_v31 = vadd.f32 %v368_v22, %v289_v19  ;;  %v300_v33 = vld [vmem:[%s1615_s11 + $0x88] sm:$0xff]  ;;  %v301_v34 = vld [vmem:[%s1615_s11 + $0x90] sm:$0xff]  ;;  %v311_v38 = vld [vmem:[%s1615_s11 + $0xe0] sm:$0xff] }
  0x4f   : > { %366 = vadd.xlane.f32.xlu0 %v365_v25  ;;  %v380_v35 = vadd.f32 %v379_v26, %v298_v21  ;;  %v389_v36 = vadd.f32 %v388_v29, %v305_v28  ;;  %v383_v37 = vadd.f32 %v300_v33, %v299_v30  ;;  %v312_v39 = vld [vmem:[%s1615_s11 + $0xe8] sm:$0xff]  ;;  %v313_v40 = vld [vmem:[%s1615_s11 + $0xf0] sm:$0xff]  ;;  %v302_v42 = vld [vmem:[%s1615_s11 + $0x98] sm:$0xff] }
  0x50   : > { %v370_v41 = vadd.f32 %v369_v31, %v290_v27  ;;  %v398_v43 = vadd.f32 %v312_v39, %v311_v38  ;;  %v307_v44 = vld [vmem:[%s1615_s11 + $0xc0] sm:$0xff]  ;;  %v308_v45 = vld [vmem:[%s1615_s11 + $0xc8] sm:$0xff]  ;;  %v309_v47 = vld [vmem:[%s1615_s11 + $0xd0] sm:$0xff] }
  0x51   : > { %v384_v46 = vadd.f32 %v383_v37, %v301_v34  ;;  %v393_v48 = vadd.f32 %v308_v45, %v307_v44  ;;  %v319_v49 = vld [vmem:[%s1615_s11 + $0x120] sm:$0xff]  ;;  %v390_v50 = vadd.f32 %v389_v36, %v306_v32  ;;  %v314_v51 = vld [vmem:[%s1615_s11 + $0xf8] sm:$0xff]  ;;  %v320_v54 = vld [vmem:[%s1615_s11 + $0x128] sm:$0xff] }
  0x52   : > { %381 = vadd.xlane.f32.xlu1 %v380_v35  ;;  %v399_v52 = vadd.f32 %v398_v43, %v313_v40  ;;  %v310_v53 = vld [vmem:[%s1615_s11 + $0xd8] sm:$0xff]  ;;  %v321_v57 = vld [vmem:[%s1615_s11 + $0x130] sm:$0xff]  ;;  %v408_v58 = vadd.f32 %v320_v54, %v319_v49  ;;  %v315_v59 = vld [vmem:[%s1615_s11 + $0x100] sm:$0xff] }
  0x53   : > { %371 = vadd.xlane.f32.xlu0 %v370_v41  ;;  %v385_v55 = vadd.f32 %v384_v46, %v302_v42  ;;  %v394_v56 = vadd.f32 %v393_v48, %v309_v47  ;;  %v316_v60 = vld [vmem:[%s1615_s11 + $0x108] sm:$0xff]  ;;  %v317_v61 = vld [vmem:[%s1615_s11 + $0x110] sm:$0xff]  ;;  %v327_v63 = vld [vmem:[%s1615_s11 + $0x160] sm:$0xff] }
  0x54   : > { %v403_v62 = vadd.f32 %v316_v60, %v315_v59  ;;  %v328_v0 = vld [vmem:[%s1615_s11 + $0x168] sm:$0xff]  ;;  %v323_v1 = vld [vmem:[%s1615_s11 + $0x140] sm:$0xff]  ;;  %v400_v2 = vadd.f32 %v399_v52, %v314_v51  ;;  %v322_v3 = vld [vmem:[%s1615_s11 + $0x138] sm:$0xff]  ;;  %v409_v4 = vadd.f32 %v408_v58, %v321_v57 }
  0x55   : > { %v318_v5 = vld [vmem:[%s1615_s11 + $0x118] sm:$0xff]  ;;  %v418_v6 = vadd.f32 %v328_v0, %v327_v63  ;;  %v324_v7 = vld [vmem:[%s1615_s11 + $0x148] sm:$0xff]  ;;  %v395_v8 = vadd.f32 %v394_v56, %v310_v53  ;;  %v329_v10 = vld [vmem:[%s1615_s11 + $0x170] sm:$0xff] }
  0x56   : > { %391 = vadd.xlane.f32.xlu1 %v390_v50  ;;  %v404_v9 = vadd.f32 %v403_v62, %v317_v61  ;;  %v413_v11 = vadd.f32 %v324_v7, %v323_v1  ;;  %v335_v12 = vld [vmem:[%s1615_s11 + $0x1a0] sm:$0xff]  ;;  %v336_v13 = vld [vmem:[%s1615_s11 + $0x1a8] sm:$0xff]  ;;  %v325_v14 = vld [vmem:[%s1615_s11 + $0x150] sm:$0xff]  ;;  %v410_v17 = vadd.f32 %v409_v4, %v322_v3 }
  0x57   : > { %386 = vadd.xlane.f32.xlu0 %v385_v55  ;;  %v331_v15 = vld [vmem:[%s1615_s11 + $0x180] sm:$0xff]  ;;  %v332_v16 = vld [vmem:[%s1615_s11 + $0x188] sm:$0xff]  ;;  %v330_v18 = vld [vmem:[%s1615_s11 + $0x178] sm:$0xff]  ;;  %v419_v19 = vadd.f32 %v418_v6, %v329_v10  ;;  %v428_v21 = vadd.f32 %v336_v13, %v335_v12 }
  0x58   : > { %v326_v20 = vld [vmem:[%s1615_s11 + $0x158] sm:$0xff]  ;;  %v405_v22 = vadd.f32 %v404_v9, %v318_v5  ;;  %v414_v23 = vadd.f32 %v413_v11, %v325_v14  ;;  %v337_v24 = vld [vmem:[%s1615_s11 + $0x1b0] sm:$0xff]  ;;  %v423_v25 = vadd.f32 %v332_v16, %v331_v15  ;;  %v343_v26 = vld [vmem:[%s1615_s11 + $0x1e0] sm:$0xff] }
  0x59   : > { %v344_v27 = vld [vmem:[%s1615_s11 + $0x1e8] sm:$0xff]  ;;  %v333_v28 = vld [vmem:[%s1615_s11 + $0x190] sm:$0xff]  ;;  %v339_v29 = vld [vmem:[%s1615_s11 + $0x1c0] sm:$0xff]  ;;  %v420_v31 = vadd.f32 %v419_v19, %v330_v18  ;;  %v429_v32 = vadd.f32 %v428_v21, %v337_v24 }
  0x5a   : > { %401 = vadd.xlane.f32.xlu1 %v400_v2  ;;  %v340_v30 = vld [vmem:[%s1615_s11 + $0x1c8] sm:$0xff]  ;;  %v438_v33 = vadd.f32 %v344_v27, %v343_v26  ;;  %v415_v34 = vadd.f32 %v414_v23, %v326_v20  ;;  %v338_v35 = vld [vmem:[%s1615_s11 + $0x1b8] sm:$0xff]  ;;  %v424_v36 = vadd.f32 %v423_v25, %v333_v28  ;;  %v345_v37 = vld [vmem:[%s1615_s11 + $0x1f0] sm:$0xff] }
  0x5b   : > { %396 = vadd.xlane.f32.xlu0 %v395_v8  ;;  %v433_v38 = vadd.f32 %v340_v30, %v339_v29  ;;  %v334_v39 = vld [vmem:[%s1615_s11 + $0x198] sm:$0xff]  ;;  %v341_v40 = vld [vmem:[%s1615_s11 + $0x1d0] sm:$0xff]  ;;  %v430_v41 = vadd.f32 %v429_v32, %v338_v35  ;;  %v347_v50 = vld [vmem:[#allocation2] sm:$0xff] }
  0x5c   : > { %v439_v42 = vadd.f32 %v438_v33, %v345_v37  ;;  %v425_v43 = vadd.f32 %v424_v36, %v334_v39  ;;  %v346_v44 = vld [vmem:[%s1615_s11 + $0x1f8] sm:$0xff]  ;;  %v349_v49 = vld [vmem:[#allocation2 + $0x10] sm:$0xff]  ;;  %v348_v56 = vld [vmem:[#allocation2 + $0x8] sm:$0xff] }
  0x5d   : > { %v434_v45 = vadd.f32 %v433_v38, %v341_v40  ;;  %v342_v46 = vld [vmem:[%s1615_s11 + $0x1d8] sm:$0xff]  ;;  %v352_v61 = vld [vmem:[#allocation2 + $0x28] sm:$0xff]  ;;  %v351_v62 = vld [vmem:[#allocation2 + $0x20] sm:$0xff]  ;;  %s1931_s11 = sld [smem:[#allocation7_spill]] (!%p1041_p7) }
  0x5e   : > { %411 = vadd.xlane.f32.xlu1 %v410_v17  ;;  %v440_v47 = vadd.f32 %v439_v42, %v346_v44  ;;  %v350_v55 = vld [vmem:[#allocation2 + $0x18] sm:$0xff]  ;;  %v353_v4 = vld [vmem:[#allocation2 + $0x30] sm:$0xff]  ;;  %v356_v9 = vld [vmem:[#allocation2 + $0x48] sm:$0xff] }
  0x5f   : > { %406 = vadd.xlane.f32.xlu0 %v405_v22  ;;  %v435_v48 = vadd.f32 %v434_v45, %v342_v46  ;;  %v354_v3 = vld [vmem:[#allocation2 + $0x38] sm:$0xff]  ;;  %v355_v10 = vld [vmem:[#allocation2 + $0x40] sm:$0xff]  ;;  %v357_v16 = vld [vmem:[#allocation2 + $0x50] sm:$0xff] }
  0x60   : > { %v358_v15 = vld [vmem:[#allocation2 + $0x58] sm:$0xff]  ;;  %v360_v21 = vld [vmem:[#allocation2 + $0x68] sm:$0xff]  ;;  %v359_v22 = vld [vmem:[#allocation2 + $0x60] sm:$0xff] }
  0x61   : > { %v362_v27 = vld [vmem:[#allocation2 + $0x78] sm:$0xff]  ;;  %v361_v28 = vld [vmem:[#allocation2 + $0x70] sm:$0xff] }
  0x62   : > { %421 = vadd.xlane.f32.xlu1 %v420_v31 }
  0x63   : > { %416 = vadd.xlane.f32.xlu0 %v415_v34 }
  0x66   : > { %431 = vadd.xlane.f32.xlu1 %v430_v41 }
  0x67   : > { %426 = vadd.xlane.f32.xlu0 %v425_v43 }
  0x6a   : > { %441 = vadd.xlane.f32.xlu1 %v440_v47 }
  0x6b   : > { %436 = vadd.xlane.f32.xlu0 %v435_v48 }
  0xdb   : > { %v377_v51 = vpop.xlane.xlu1 %376 }
  0xdc   : > { %v445_v52 = vadd.f32 %v377_v51, %v349_v49  ;;  %v367_v53 = vpop.xlane.xlu0 %366  ;;  %v512_v49 = vld [vmem:[%s1919_s1] sm:$0xff] (!%p1041_p7) }
  0xdd   : > { %v443_v54 = vadd.f32 %v367_v53, %v347_v50  ;;  %1149 = vmatprep.mubr.f32.mxu0 (!%p1041_p7), %v512_v49 }
  0xde   : > { %462 = vst.msk [vmem:[#allocation2 + $0x10] sm:$0xff] %vm459_vm1, %v445_v52 }
  0xdf   : > { %460 = vst.msk [vmem:[#allocation2] sm:$0xff] %vm459_vm1, %v443_v54  ;;  %v382_v57 = vpop.xlane.xlu1 %381 }
  0xe0   : > { %v446_v58 = vadd.f32 %v382_v57, %v350_v55  ;;  %v372_v59 = vpop.xlane.xlu0 %371 }
  0xe1   : > { %v444_v60 = vadd.f32 %v372_v59, %v348_v56 }
  0xe2   : > { %463 = vst.msk [vmem:[#allocation2 + $0x18] sm:$0xff] %vm459_vm1, %v446_v58 }
  0xe3   : > { %461 = vst.msk [vmem:[#allocation2 + $0x8] sm:$0xff] %vm459_vm1, %v444_v60  ;;  %v392_v63 = vpop.xlane.xlu1 %391 }
  0xe4   : > { %v448_v0 = vadd.f32 %v392_v63, %v352_v61  ;;  %v387_v1 = vpop.xlane.xlu0 %386 }
  0xe5   : > { %v447_v2 = vadd.f32 %v387_v1, %v351_v62  ;;  %v482_v35 = vld [vmem:[#allocation2 + $0x10] sm:$0xff] (!%p1041_p7) }
  0xe6   : > { %465 = vst.msk [vmem:[#allocation2 + $0x28] sm:$0xff] %vm459_vm1, %v448_v0  ;;  %v480_v33 = vld [vmem:[#allocation2] sm:$0xff] (!%p1041_p7)  ;;  %v498_v39 = vmul.f32 (!%p1041_p7), 0.0009765625, %v482_v35 }
  0xe7   : > { %464 = vst.msk [vmem:[#allocation2 + $0x20] sm:$0xff] %vm459_vm1, %v447_v2  ;;  %v402_v5 = vpop.xlane.xlu1 %401  ;;  %v496_v36 = vmul.f32 (!%p1041_p7), 0.0009765625, %v480_v33  ;;  %v611_v33 = vld [vmem:[%s1921_s3 + $0x10] sm:$0xff] (!%p1041_p7)  ;;  %v613_v35 = vld [vmem:[%s1921_s3 + $0x20] sm:$0xff] (!%p1041_p7) }
  0xe8   : > { %v450_v6 = vadd.f32 %v402_v5, %v354_v3  ;;  %v397_v7 = vpop.xlane.xlu0 %396 }
  0xe9   : > { %v449_v8 = vadd.f32 %v397_v7, %v353_v4  ;;  %v483_v38 = vld [vmem:[#allocation2 + $0x18] sm:$0xff] (!%p1041_p7) }
  0xea   : > { %467 = vst.msk [vmem:[#allocation2 + $0x38] sm:$0xff] %vm459_vm1, %v450_v6  ;;  %v481_v34 = vld [vmem:[#allocation2 + $0x8] sm:$0xff] (!%p1041_p7)  ;;  %v499_v42 = vmul.f32 (!%p1041_p7), 0.0009765625, %v483_v38  ;;  %v616_v38 = vld [vmem:[%s1921_s3 + $0x38] sm:$0xff] (!%p1041_p7) }
  0xeb   : > { %466 = vst.msk [vmem:[#allocation2 + $0x30] sm:$0xff] %vm459_vm1, %v449_v8  ;;  %v412_v11 = vpop.xlane.xlu1 %411  ;;  %v497_v37 = vmul.f32 (!%p1041_p7), 0.0009765625, %v481_v34  ;;  %v612_v34 = vld [vmem:[%s1921_s3 + $0x18] sm:$0xff] (!%p1041_p7) }
  0xec   : > { %v452_v12 = vadd.f32 %v412_v11, %v356_v9  ;;  %v407_v13 = vpop.xlane.xlu0 %406  ;;  %v1191_v46 = vpack.c.bf16 (!%p1041_p7), %v499_v42, %v498_v39  ;;  %v514_v11 = vld [vmem:[%s1919_s1 + $0x10] sm:$0xff] (!%p1041_p7)  ;;  %v617_v39 = vld [vmem:[%s1921_s3 + $0x40] sm:$0xff] (!%p1041_p7)  ;;  %v620_v42 = vld [vmem:[%s1921_s3 + $0x58] sm:$0xff] (!%p1041_p7) }
  0xed   : > { %v451_v14 = vadd.f32 %v407_v13, %v355_v10  ;;  %v485_v41 = vld [vmem:[#allocation2 + $0x28] sm:$0xff] (!%p1041_p7)  ;;  %v1187_v43 = vpack.c.bf16 (!%p1041_p7), %v497_v37, %v496_v36  ;;  %v609_v13 = vld [vmem:[%s1921_s3] sm:$0xff] (!%p1041_p7)  ;;  %v615_v37 = vld [vmem:[%s1921_s3 + $0x30] sm:$0xff] (!%p1041_p7) }
  0xee   : > { %469 = vst.msk [vmem:[#allocation2 + $0x48] sm:$0xff] %vm459_vm1, %v452_v12  ;;  %v484_v40 = vld [vmem:[#allocation2 + $0x20] sm:$0xff] (!%p1041_p7)  ;;  %v501_v45 = vmul.f32 (!%p1041_p7), 0.0009765625, %v485_v41  ;;  %v513_v10 = vld [vmem:[%s1919_s1 + $0x8] sm:$0xff] (!%p1041_p7)  ;;  %v515_v12 = vld [vmem:[%s1919_s1 + $0x18] sm:$0xff] (!%p1041_p7)  ;;  %1163 = vmatprep.mubr.msk.f32.mxu1 (!%p1041_p7), %vm641_vm2, %v609_v13 }
  0xef   : > { %468 = vst.msk [vmem:[#allocation2 + $0x40] sm:$0xff] %vm459_vm1, %v451_v14  ;;  %v422_v17 = vpop.xlane.xlu1 %421  ;;  %v500_v44 = vmul.f32 (!%p1041_p7), 0.0009765625, %v484_v40  ;;  %1188 = vmatprep.subr.bf16.mxu0 (!%p1041_p7), %v1187_v43  ;;  %v517_v14 = vld [vmem:[%s1920_s2 + $0x8] sm:$0xff] (!%p1041_p7)  ;;  %v619_v41 = vld [vmem:[%s1921_s3 + $0x50] sm:$0xff] (!%p1041_p7) }
  0xf0   : > { %v454_v18 = vadd.f32 %v422_v17, %v358_v15  ;;  %v417_v19 = vpop.xlane.xlu0 %416  ;;  %1190 = vmatpush3.bf16.msra.mxu0 (!%p1041_p7), %v1187_v43  ;;  %v516_v15 = vld [vmem:[%s1920_s2] sm:$0xff] (!%p1041_p7)  ;;  %v614_v36 = vld [vmem:[%s1921_s3 + $0x28] sm:$0xff] (!%p1041_p7) }
  0xf1   : > { %v453_v20 = vadd.f32 %v417_v19, %v357_v16  ;;  %v487_v48 = vld [vmem:[#allocation2 + $0x38] sm:$0xff] (!%p1041_p7)  ;;  %1192 = vmatprep.subr.bf16.mxu0 (!%p1041_p7), %v1191_v46  ;;  %v1195_v50 = vpack.c.bf16 (!%p1041_p7), %v501_v45, %v500_v44  ;;  %v618_v40 = vld [vmem:[%s1921_s3 + $0x48] sm:$0xff] (!%p1041_p7)  ;;  %v621_v43 = vld [vmem:[%s1921_s3 + $0x60] sm:$0xff] (!%p1041_p7) }
  0xf2   : > { %471 = vst.msk [vmem:[#allocation2 + $0x58] sm:$0xff] %vm459_vm1, %v454_v18  ;;  %v486_v47 = vld [vmem:[#allocation2 + $0x30] sm:$0xff] (!%p1041_p7)  ;;  %v503_v52 = vmul.f32 (!%p1041_p7), 0.0009765625, %v487_v48  ;;  %v622_v44 = vld [vmem:[%s1921_s3 + $0x68] sm:$0xff] (!%p1041_p7)  ;;  %v625_v48 = vld [vmem:[%s1931_s11] sm:$0xff] (!%p1041_p7) }
  0xf3   : > { %470 = vst.msk [vmem:[#allocation2 + $0x50] sm:$0xff] %vm459_vm1, %v453_v20  ;;  %v432_v23 = vpop.xlane.xlu1 %431  ;;  %v502_v51 = vmul.f32 (!%p1041_p7), 0.0009765625, %v486_v47  ;;  %v519_v20 = vld [vmem:[%s1920_s2 + $0x18] sm:$0xff] (!%p1041_p7)  ;;  %v623_v45 = vld [vmem:[%s1921_s3 + $0x70] sm:$0xff] (!%p1041_p7)  ;;  %v626_v47 = vld [vmem:[%s1931_s11 + $0x8] sm:$0xff] (!%p1041_p7) }
  0xf4   : > { %v456_v24 = vadd.f32 %v432_v23, %v360_v21  ;;  %v427_v25 = vpop.xlane.xlu0 %426  ;;  %1194 = vmatpush3.bf16.msra.mxu0 (!%p1041_p7), %v1191_v46  ;;  %v624_v46 = vld [vmem:[%s1921_s3 + $0x78] sm:$0xff] (!%p1041_p7)  ;;  %v634_v13 = vld [vmem:[%s1931_s11 + $0x48] sm:$0xff] (!%p1041_p7) }
  0xf5   : > { %v455_v26 = vadd.f32 %v427_v25, %v359_v22  ;;  %479 = sbr.rel (%p1041_p7) target bundleno = 770 (0x302), region = 52  ;;  %v489_v54 = vld [vmem:[#allocation2 + $0x48] sm:$0xff] (!%p1041_p7)  ;;  %1196 = vmatprep.subr.bf16.mxu0 (!%p1041_p7), %v1195_v50  ;;  %v1199_v55 = vpack.c.bf16 (!%p1041_p7), %v503_v52, %v502_v51  ;;  %v518_v22 = vld [vmem:[%s1920_s2 + $0x10] sm:$0xff] (!%p1041_p7) }
  0xf6   : > { %473 = vst.msk [vmem:[#allocation2 + $0x68] sm:$0xff] %vm459_vm1, %v456_v24  ;;  %v488_v53 = vld [vmem:[#allocation2 + $0x40] sm:$0xff] (!%p1041_p7)  ;;  %v505_v57 = vmul.f32 (!%p1041_p7), 0.0009765625, %v489_v54 }
  0xf7   : > { %472 = vst.msk [vmem:[#allocation2 + $0x60] sm:$0xff] %vm459_vm1, %v455_v26  ;;  %v442_v29 = vpop.xlane.xlu1 %441  ;;  %v504_v56 = vmul.f32 (!%p1041_p7), 0.0009765625, %v488_v53  ;;  %v628_v53 = vld [vmem:[%s1931_s11 + $0x18] sm:$0xff] (!%p1041_p7) }
  0xf8   : > { %v458_v30 = vadd.f32 %v442_v29, %v362_v27  ;;  %v437_v31 = vpop.xlane.xlu0 %436  ;;  %1198 = vmatpush3.bf16.msra.mxu0 (!%p1041_p7), %v1195_v50 }
  0xf9   : > { %v457_v32 = vadd.f32 %v437_v31, %v361_v28  ;;  %v491_v59 = vld [vmem:[#allocation2 + $0x58] sm:$0xff] (!%p1041_p7)  ;;  %1200 = vmatprep.subr.bf16.mxu0 (!%p1041_p7), %v1199_v55  ;;  %v1203_v60 = vpack.c.bf16 (!%p1041_p7), %v505_v57, %v504_v56 }
  0xfa   : > { %475 = vst.msk [vmem:[#allocation2 + $0x78] sm:$0xff] %vm459_vm1, %v458_v30  ;;  %v490_v58 = vld [vmem:[#allocation2 + $0x50] sm:$0xff] (!%p1041_p7)  ;;  %v507_v62 = vmul.f32 (!%p1041_p7), 0.0009765625, %v491_v59 }
  0xfb   : > { %474 = vst.msk [vmem:[#allocation2 + $0x70] sm:$0xff] %vm459_vm1, %v457_v32  ;;  %v506_v61 = vmul.f32 (!%p1041_p7), 0.0009765625, %v490_v58  ;;  %v610_v32 = vld [vmem:[%s1921_s3 + $0x8] sm:$0xff] (!%p1041_p7) }
  0xfc   : > { %1202 = vmatpush3.bf16.msra.mxu0 %v1199_v55  ;;  %v627_v55 = vld [vmem:[%s1931_s11 + $0x10] sm:$0xff] }
  0xfd   : > { %v493_v0 = vld [vmem:[#allocation2 + $0x68] sm:$0xff]  ;;  %1204 = vmatprep.subr.bf16.mxu0 %v1203_v60  ;;  %v1207_v1 = vpack.c.bf16 %v507_v62, %v506_v61 }
  0xfe   : > { %v492_v63 = vld [vmem:[#allocation2 + $0x60] sm:$0xff]  ;;  %v509_v3 = vmul.f32 0.0009765625, %v493_v0  ;;  %v630_v61 = vld [vmem:[%s1931_s11 + $0x28] sm:$0xff] }
  0xff   : > { %v508_v2 = vmul.f32 0.0009765625, %v492_v63  ;;  %v629_v63 = vld [vmem:[%s1931_s11 + $0x20] sm:$0xff] }
 0x100   : > { %1206 = vmatpush3.bf16.msra.mxu0 %v1203_v60 }
 0x101   : > { %v495_v5 = vld [vmem:[#allocation2 + $0x78] sm:$0xff]  ;;  %1208 = vmatprep.subr.bf16.mxu0 %v1207_v1  ;;  %v1211_v6 = vpack.c.bf16 %v509_v3, %v508_v2 }
 0x102   : > { %v494_v4 = vld [vmem:[#allocation2 + $0x70] sm:$0xff]  ;;  %v511_v8 = vmul.f32 0.0009765625, %v495_v5  ;;  %v632_v5 = vld [vmem:[%s1931_s11 + $0x38] sm:$0xff] }
 0x103   : > { %v510_v7 = vmul.f32 0.0009765625, %v494_v4 }
 0x104   : > { %1210 = vmatpush3.bf16.msra.mxu0 %v1207_v1 }
 0x105   : > { %1212 = vmatprep.subr.bf16.mxu0 %v1211_v6  ;;  %v1215_v9 = vpack.c.bf16 %v511_v8, %v510_v7  ;;  %v631_v7 = vld [vmem:[%s1931_s11 + $0x30] sm:$0xff] }
 0x108   : > { %1214 = vmatpush3.bf16.msra.mxu0 %v1211_v6 }
 0x109   : > { %1216 = vmatprep.subr.bf16.mxu0 %v1215_v9 }
 0x10c   : > { %1218 = vmatpush3.bf16.msra.mxu0 %v1215_v9 }
 0x10f   : > { %1150 = vmatmul.mubr.f32.vlgmr.msra.gmra.mrb[0].mxu0 %v513_v10 }
 0x110   : > { %1152 = vmatprep.mubr.f32.mxu0 %v514_v11 }
 0x113   : > { %1153 = vmatmul.mubr.f32.gmra.mrb[2].mxu0 %v515_v12 }
 0x1e2   : > { %v1151_v16 = vpop.f32.mrb[0].mxu0 }
 0x1e3   : > { %v592_v17 = vadd.f32 %v1151_v16, %v517_v14  ;;  %v586_v18 = vpop.f32.mrb[1].mxu0  ;;  %v633_v16 = vld [vmem:[%s1931_s11 + $0x40] sm:$0xff] }
 0x1e4   : > { %v587_v19 = vadd.f32 %v586_v18, %v516_v15 }
 0x1e5   : > { %v606_v21 = vmax.f32 %v592_v17, 0.0 }
 0x1e6   : > { %v605_v23 = vmax.f32 %v587_v19, 0.0  ;;  %v1154_v24 = vpop.f32.mrb[2].mxu0 }
 0x1e7   : > { %v602_v25 = vadd.f32 %v1154_v24, %v519_v20  ;;  %v596_v26 = vpop.f32.mrb[3].mxu0 }
 0x1e8   : > { %v597_v27 = vadd.f32 %v596_v26, %v518_v22  ;;  %v1219_v28 = vpack.c.bf16 %v606_v21, %v605_v23 }
 0x1e9   : > { %v608_v29 = vmax.f32 %v602_v25, 0.0  ;;  %v636_v25 = vld [vmem:[%s1931_s11 + $0x58] sm:$0xff] }
 0x1ea   : > { %v607_v30 = vmax.f32 %v597_v27, 0.0  ;;  %1220 = vmatprep.subr.bf16.mxu1 %v1219_v28 }
 0x1eb   : > { %1222 = vmatpush3.bf16.msra.mxu1 %v1219_v28  ;;  %v635_v28 = vld [vmem:[%s1931_s11 + $0x50] sm:$0xff] }
 0x1ec   : > { %v1223_v31 = vpack.c.bf16 %v608_v29, %v607_v30 }
 0x1ee   : > { %1224 = vmatprep.subr.bf16.mxu1 %v1223_v31 }
 0x1ef   : > { %1226 = vmatpush3.bf16.msra.mxu1 %v1223_v31 }
 0x1f2   : > { %1164 = vmatmul.mubr.msk.f32.vlgmr.msra.gmra.mrb[0].mxu1 %vm641_vm2, %v610_v32 }
 0x1f3   : > { %1166 = vmatprep.mubr.msk.f32.mxu1 %vm641_vm2, %v611_v33 }
 0x1f6   : > { %1167 = vmatmul.mubr.msk.f32.gmra.mrb[2].mxu1 %vm641_vm2, %v612_v34 }
 0x1f7   : > { %1169 = vmatprep.mubr.msk.f32.mxu1 %vm641_vm2, %v613_v35 }
 0x1fa   : > { %1170 = vmatmul.mubr.msk.f32.gmra.mrb[4].mxu1 %vm641_vm2, %v614_v36 }
 0x1fb   : > { %1172 = vmatprep.mubr.msk.f32.mxu1 %vm641_vm2, %v615_v37  ;;  %v638_v37 = vld [vmem:[%s1931_s11 + $0x68] sm:$0xff] }
 0x1fe   : > { %1173 = vmatmul.mubr.msk.f32.gmra.mrb[6].mxu1 %vm641_vm2, %v616_v38 }
 0x1ff   : > { %1175 = vmatprep.mubr.msk.f32.mxu1 %vm641_vm2, %v617_v39 }
 0x202   : > { %1176 = vmatmul.mubr.msk.f32.gmra.mrb[8].mxu1 %vm641_vm2, %v618_v40  ;;  %v637_v40 = vld [vmem:[%s1931_s11 + $0x60] sm:$0xff] }
 0x203   : > { %1178 = vmatprep.mubr.msk.f32.mxu1 %vm641_vm2, %v619_v41 }
 0x206   : > { %1179 = vmatmul.mubr.msk.f32.gmra.mrb[10].mxu1 %vm641_vm2, %v620_v42 }
 0x207   : > { %1181 = vmatprep.mubr.msk.f32.mxu1 %vm641_vm2, %v621_v43 }
 0x20a   : > { %1182 = vmatmul.mubr.msk.f32.gmra.mrb[12].mxu1 %vm641_vm2, %v622_v44 }
 0x20b   : > { %1184 = vmatprep.mubr.msk.f32.mxu1 %vm641_vm2, %v623_v45 }
 0x20e   : > { %1185 = vmatmul.mubr.msk.f32.gmra.mrb[14].mxu1 %vm641_vm2, %v624_v46 }
 0x2c5   : > { %v1165_v49 = vpop.f32.mrb[0].mxu1 }
 0x2c6   : > { %v762_v50 = vadd.f32 %v1165_v49, %v626_v47  ;;  %v756_v51 = vpop.f32.mrb[1].mxu1  ;;  %v640_v49 = vld [vmem:[%s1931_s11 + $0x78] sm:$0xff] }
 0x2c7   : > { %v757_v52 = vadd.f32 %v756_v51, %v625_v48 }
 0x2c8   : > { %v1059_v54 = vmul.f32 -1.442695, %v762_v50 }
 0x2c9   : > { %v1058_v56 = vmul.f32 -1.442695, %v757_v52  ;;  %v1168_v57 = vpop.f32.mrb[2].mxu1  ;;  %v639_v52 = vld [vmem:[%s1931_s11 + $0x70] sm:$0xff] }
 0x2ca   : > { %1302 = vpow2.f32 %v1059_v54  ;;  %v772_v58 = vadd.f32 %v1168_v57, %v628_v53  ;;  %v766_v59 = vpop.f32.mrb[3].mxu1 }
 0x2cb   : > { %1304 = vpow2.f32 %v1058_v56  ;;  %v767_v60 = vadd.f32 %v766_v59, %v627_v55 }
 0x2cc   : > { %v1061_v62 = vmul.f32 -1.442695, %v772_v58 }
 0x2cd   : > { %v1060_v0 = vmul.f32 -1.442695, %v767_v60  ;;  %v1171_v1 = vpop.f32.mrb[4].mxu1 }
 0x2ce   : > { %1306 = vpow2.f32 %v1061_v62  ;;  %v782_v2 = vadd.f32 %v1171_v1, %v630_v61  ;;  %v776_v3 = vpop.f32.mrb[5].mxu1 }
 0x2cf   : > { %1308 = vpow2.f32 %v1060_v0  ;;  %v777_v4 = vadd.f32 %v776_v3, %v629_v63 }
 0x2d0   : > { %v1063_v6 = vmul.f32 -1.442695, %v782_v2 }
 0x2d1   : > { %v1062_v8 = vmul.f32 -1.442695, %v777_v4  ;;  %v1174_v9 = vpop.f32.mrb[6].mxu1 }
 0x2d2   : > { %1310 = vpow2.f32 %v1063_v6  ;;  %v792_v10 = vadd.f32 %v1174_v9, %v632_v5  ;;  %v786_v11 = vpop.f32.mrb[7].mxu1 }
 0x2d3   : > { %1312 = vpow2.f32 %v1062_v8  ;;  %v787_v12 = vadd.f32 %v786_v11, %v631_v7 }
 0x2d4   : > { %v1303_v14 = vpop.eup %1302  ;;  %v1065_v15 = vmul.f32 -1.442695, %v792_v10 }
 0x2d5   : > { %v1305_v17 = vpop.eup %1304  ;;  %v884_v18 = vadd.f32 1.0, %v1303_v14  ;;  %v1064_v19 = vmul.f32 -1.442695, %v787_v12  ;;  %v1177_v20 = vpop.f32.mrb[8].mxu1 }
 0x2d6   : > { %v883_v21 = vadd.f32 1.0, %v1305_v17  ;;  %1314 = vpow2.f32 %v1065_v15  ;;  %v802_v22 = vadd.f32 %v1177_v20, %v634_v13  ;;  %v796_v23 = vpop.f32.mrb[9].mxu1 }
 0x2d7   : > { %1316 = vrcp.f32 %v884_v18  ;;  %v797_v24 = vadd.f32 %v796_v23, %v633_v16 }
 0x2d8   : > { %v1307_v26 = vpop.eup %1306  ;;  %1318 = vrcp.f32 %v883_v21  ;;  %v1067_v27 = vmul.f32 -1.442695, %v802_v22 }
 0x2d9   : > { %v1309_v29 = vpop.eup %1308  ;;  %v886_v30 = vadd.f32 1.0, %v1307_v26  ;;  %1320 = vpow2.f32 %v1064_v19  ;;  %v1066_v31 = vmul.f32 -1.442695, %v797_v24  ;;  %v1180_v32 = vpop.f32.mrb[10].mxu1 }
 0x2da   : > { %v885_v33 = vadd.f32 1.0, %v1309_v29  ;;  %1322 = vpow2.f32 %v1067_v27  ;;  %v812_v34 = vadd.f32 %v1180_v32, %v636_v25  ;;  %v806_v35 = vpop.f32.mrb[11].mxu1 }
 0x2db   : > { %1324 = vrcp.f32 %v886_v30  ;;  %v807_v36 = vadd.f32 %v806_v35, %v635_v28 }
 0x2dc   : > { %v1311_v38 = vpop.eup %1310  ;;  %1326 = vrcp.f32 %v885_v33  ;;  %v1069_v39 = vmul.f32 -1.442695, %v812_v34 }
 0x2dd   : > { %v1313_v41 = vpop.eup %1312  ;;  %v888_v42 = vadd.f32 1.0, %v1311_v38  ;;  %1328 = vpow2.f32 %v1066_v31  ;;  %v1068_v43 = vmul.f32 -1.442695, %v807_v36  ;;  %v1183_v44 = vpop.f32.mrb[12].mxu1 }
 0x2de   : > { %v887_v45 = vadd.f32 1.0, %v1313_v41  ;;  %1330 = vpow2.f32 %v1069_v39  ;;  %v822_v46 = vadd.f32 %v1183_v44, %v638_v37  ;;  %v816_v47 = vpop.f32.mrb[13].mxu1 }
 0x2df   : > { %1332 = vrcp.f32 %v888_v42  ;;  %v817_v48 = vadd.f32 %v816_v47, %v637_v40 }
 0x2e0   : > { %v1315_v50 = vpop.eup %1314  ;;  %1334 = vrcp.f32 %v887_v45  ;;  %v1071_v51 = vmul.f32 -1.442695, %v822_v46 }
 0x2e1   : > { %v1317_v53 = vpop.eup %1316  ;;  %v890_v54 = vadd.f32 1.0, %v1315_v50  ;;  %1336 = vpow2.f32 %v1068_v43  ;;  %v1070_v55 = vmul.f32 -1.442695, %v817_v48  ;;  %v1186_v56 = vpop.f32.mrb[14].mxu1 }
 0x2e2   : > { %v1319_v57 = vpop.eup %1318  ;;  %932 = vst.msk [vmem:[%s1626_s30 + $0x8] sm:$0xff] %vm459_vm1, %v1317_v53  ;;  %1338 = vpow2.f32 %v1071_v51  ;;  %v832_v58 = vadd.f32 %v1186_v56, %v640_v49  ;;  %v826_v59 = vpop.f32.mrb[15].mxu1 }
 0x2e3   : > { %v1321_v60 = vpop.eup %1320  ;;  %931 = vst.msk [vmem:[%s1626_s30] sm:$0xff] %vm459_vm1, %v1319_v57  ;;  %1340 = vrcp.f32 %v890_v54  ;;  %v827_v61 = vadd.f32 %v826_v59, %v639_v52 }
 0x2e4   : > { %v1323_v62 = vpop.eup %1322  ;;  %v889_v63 = vadd.f32 1.0, %v1321_v60  ;;  %1342 = vpow2.f32 %v1070_v55  ;;  %v1073_v0 = vmul.f32 -1.442695, %v832_v58 }
 0x2e5   : > { %v1325_v1 = vpop.eup %1324  ;;  %v892_v2 = vadd.f32 1.0, %v1323_v62  ;;  %v1072_v3 = vmul.f32 -1.442695, %v827_v61 }
 0x2e6   : > { %v1327_v4 = vpop.eup %1326  ;;  %934 = vst.msk [vmem:[%s1626_s30 + $0x18] sm:$0xff] %vm459_vm1, %v1325_v1  ;;  %1344 = vrcp.f32 %v889_v63 }
 0x2e7   : > { %v1329_v5 = vpop.eup %1328  ;;  %933 = vst.msk [vmem:[%s1626_s30 + $0x10] sm:$0xff] %vm459_vm1, %v1327_v4  ;;  %1346 = vrcp.f32 %v892_v2 }
 0x2e8   : > { %v1331_v6 = vpop.eup %1330  ;;  %v891_v7 = vadd.f32 1.0, %v1329_v5  ;;  %1348 = vpow2.f32 %v1073_v0 }
 0x2e9   : > { %v1333_v8 = vpop.eup %1332  ;;  %v894_v9 = vadd.f32 1.0, %v1331_v6  ;;  %1350 = vpow2.f32 %v1072_v3 }
 0x2ea   : > { %v1335_v10 = vpop.eup %1334  ;;  %936 = vst.msk [vmem:[%s1626_s30 + $0x28] sm:$0xff] %vm459_vm1, %v1333_v8  ;;  %1352 = vrcp.f32 %v891_v7 }
 0x2eb   : > { %v1337_v11 = vpop.eup %1336  ;;  %935 = vst.msk [vmem:[%s1626_s30 + $0x20] sm:$0xff] %vm459_vm1, %v1335_v10  ;;  %1354 = vrcp.f32 %v894_v9 }
 0x2ec   : > { %v1339_v12 = vpop.eup %1338  ;;  %v893_v13 = vadd.f32 1.0, %v1337_v11 }
 0x2ed   : > { %v1341_v14 = vpop.eup %1340  ;;  %v896_v15 = vadd.f32 1.0, %v1339_v12 }
 0x2ee   : > { %v1343_v16 = vpop.eup %1342  ;;  %938 = vst.msk [vmem:[%s1626_s30 + $0x38] sm:$0xff] %vm459_vm1, %v1341_v14  ;;  %1356 = vrcp.f32 %v893_v13 }
 0x2ef   : > { %1358 = vrcp.f32 %v896_v15  ;;  %v895_v17 = vadd.f32 1.0, %v1343_v16 }
 0x2f0   : > { %v1345_v18 = vpop.eup %1344 }
 0x2f1   : > { %v1347_v19 = vpop.eup %1346  ;;  %937 = vst.msk [vmem:[%s1626_s30 + $0x30] sm:$0xff] %vm459_vm1, %v1345_v18  ;;  %1360 = vrcp.f32 %v895_v17 }
 0x2f2   : > { %v1349_v20 = vpop.eup %1348  ;;  %940 = vst.msk [vmem:[%s1626_s30 + $0x48] sm:$0xff] %vm459_vm1, %v1347_v19 }
 0x2f3   : > { %v1351_v21 = vpop.eup %1350  ;;  %v898_v22 = vadd.f32 1.0, %v1349_v20 }
 0x2f4   : > { %v1353_v23 = vpop.eup %1352  ;;  %v897_v24 = vadd.f32 1.0, %v1351_v21 }
 0x2f5   : > { %v1355_v25 = vpop.eup %1354  ;;  %939 = vst.msk [vmem:[%s1626_s30 + $0x40] sm:$0xff] %vm459_vm1, %v1353_v23  ;;  %1362 = vrcp.f32 %v898_v22 }
 0x2f6   : > { %942 = vst.msk [vmem:[%s1626_s30 + $0x58] sm:$0xff] %vm459_vm1, %v1355_v25  ;;  %1364 = vrcp.f32 %v897_v24 }
 0x2f8   : > { %v1357_v26 = vpop.eup %1356 }
 0x2f9   : > { %v1359_v27 = vpop.eup %1358  ;;  %941 = vst.msk [vmem:[%s1626_s30 + $0x50] sm:$0xff] %vm459_vm1, %v1357_v26 }
 0x2fa   : > { %944 = vst.msk [vmem:[%s1626_s30 + $0x68] sm:$0xff] %vm459_vm1, %v1359_v27 }
 0x2fb   : > { %v1361_v28 = vpop.eup %1360 }
 0x2fc   : > { %943 = vst.msk [vmem:[%s1626_s30 + $0x60] sm:$0xff] %vm459_vm1, %v1361_v28 }
 0x2ff   : > { %v1363_v29 = vpop.eup %1362 }
 0x300   : > { %v1365_v30 = vpop.eup %1364  ;;  %946 = vst.msk [vmem:[%s1626_s30 + $0x78] sm:$0xff] %vm459_vm1, %v1363_v29 }
 0x301   : > { %945 = vst.msk [vmem:[%s1626_s30 + $0x70] sm:$0xff] %vm459_vm1, %v1365_v30 }
 0x302 PF: > { %s18_s25 = sadd.s32 1, %s1462_s25   ;;  %s1932_s8 = sld [smem:[#allocation6_spill]] }
 0x303   : > { %p15_p6 = scmp.ge.s32.totalorder %s18_s25, 6   ;;  %s1933_s18 = smov %s1438_s19 }
 0x304   : > { %s1934_s19 = smov %s1442_s20  ;;  %s1935_s20 = smov %s1566_s13 }
 0x305   : > { %s1936_s21 = smov %s1454_s23  ;;  %s1937_s22 = smov %s1458_s24 }
 0x306   : > { %s1939_s24 = smov %s1945_s28  ;;  %17 = sbr.rel (!%p15_p6) target bundleno = 7 (0x7), region = 88 }
 0x308   : > { %s1938_s23 = smov %s1932_s8 }
 0x30d   :  { %968 = vsyncpa [#allocation4], 1 }
 0x30e   :  { %970 = vsyncpa [#allocation4 + $0x1], 1 }

</bundles_post_ra>
